<compile_context>
chip_gen: v7x
topology: tpu7x:2x2x1
jax: 0.10.0
libtpu: 0.0.40
codegen_flags: <defaults>
</compile_context>

<pallas_src>
import math
import numpy as np
import jax
import jax.numpy as jnp
from jax.experimental import pallas as pl
from jax.experimental.pallas import tpu as pltpu


# ----------------------------- schedule (host / numpy, float64 like torch) -----------------------------

def cosine_beta_schedule(timesteps, s=0.008):
    steps = timesteps + 1
    x = np.linspace(0, timesteps, steps, dtype=np.float64)
    alphas_cumprod = np.cos((x / timesteps + s) / (1 + s) * math.pi * 0.5) ** 2
    alphas_cumprod = alphas_cumprod / alphas_cumprod[0]
    betas = 1.0 - alphas_cumprod[1:] / alphas_cumprod[:-1]
    return np.clip(betas, 0.0, 0.999)


# ----------------------------- fused Pallas kernel -----------------------------

def fused_loss_kernel(c1_ref, c2_ref, p2w_ref,            # (B,) f32 scalars in SMEM
                      img_ref, noise_ref,                  # (1, C, N) VMEM blocks
                      scale_ref, shift_ref,                # (1, C, 1) VMEM blocks (FiLM cond)
                      w_ref, b_ref,                        # (C, 3C), (C, 1) resident weights
                      o_ref):                              # (1, 1, 128) lane-dense per-batch loss
    b = pl.program_id(0)
    x0 = img_ref[0]          # (C, N) raw data in [0, 1]
    noise = noise_ref[0]     # (C, N)
    C, N = x0.shape

    # --- normalize_to_neg_one_to_one + q_sample (fused, stays in vregs) ---
    x_t = c1_ref[b] * (x0 * 2.0 - 1.0) + c2_ref[b] * noise          # (C, N) f32

    # --- 3-tap conv as ONE MXU contraction over a stacked (3C, N) operand ---
    # shifts via XLU roll + boundary-column mask (zero padding like Conv1d(padding=1))
    col = jax.lax.broadcasted_iota(jnp.int32, (C, N), 1)
    x_lm1 = jnp.where(col == 0, 0.0, pltpu.roll(x_t, shift=1, axis=1))          # x[:, n-1]
    x_lp1 = jnp.where(col == N - 1, 0.0, pltpu.roll(x_t, shift=N - 1, axis=1))  # x[:, n+1]
    stacked = jnp.concatenate([x_lm1, x_t, x_lp1], axis=0)                      # (3C, N)

    conv = jnp.dot(w_ref[...].astype(jnp.bfloat16),
                   stacked.astype(jnp.bfloat16),
                   preferred_element_type=jnp.float32) + b_ref[...]             # (C, N) f32

    # --- FiLM conditioning (time + class embedding), elementwise in f32 ---
    pred = conv * (1.0 + scale_ref[0]) + shift_ref[0]                           # (C, N)

    # --- per-batch weighted L1 (mean over C*N) * p2_loss_weight[t] ---
    val = jnp.sum(jnp.abs(pred - noise)) * p2w_ref[b] * (1.0 / float(C * N))
    o_ref[...] = jnp.full(o_ref.shape, val, jnp.float32)                        # lane-dense store


# ----------------------------- module -----------------------------

class GaussianDiffusion1DClsFreePallas:
    """Mirrors GaussianDiffusion1D_cls_free.forward (objective='pred_noise', loss='l1')."""

    def __init__(self, *, channels, seq_length, num_classes, emb_dim=32,
                 timesteps=1000, p2_loss_weight_gamma=0.0, p2_loss_weight_k=1, seed=0):
        self.channels = channels
        self.seq_length = seq_length
        self.num_timesteps = int(timesteps)
        self.emb_dim = emb_dim

        betas = cosine_beta_schedule(timesteps)
        alphas = 1.0 - betas
        alphas_cumprod = np.cumprod(alphas)

        f32 = lambda a: jnp.asarray(a, jnp.float32)
        self.betas = f32(betas)
        self.sqrt_alphas_cumprod = f32(np.sqrt(alphas_cumprod))
        self.sqrt_one_minus_alphas_cumprod = f32(np.sqrt(1.0 - alphas_cumprod))
        self.p2_loss_weight = f32(
            (p2_loss_weight_k + alphas_cumprod / (1.0 - alphas_cumprod)) ** (-p2_loss_weight_gamma)
        )

        # Deterministic synthetic denoiser parameters.
        k1, k2, k3, k4 = jax.random.split(jax.random.PRNGKey(seed), 4)
        C = channels
        self.class_emb = 0.02 * jax.random.normal(k1, (num_classes, emb_dim), jnp.float32)
        self.cond_w = 0.02 * jax.random.normal(k2, (emb_dim, 2 * C), jnp.float32)
        self.cond_b = jnp.zeros((2 * C,), jnp.float32)
        conv_w = 0.2 * jax.random.normal(k3, (3, C, C), jnp.float32)     # (tap, C_out, C_in)
        # Pre-flatten the 3-tap kernel to (C, 3C): one deep MXU contraction instead of 3 shallow ones.
        self.conv_w_flat = jnp.concatenate([conv_w[0], conv_w[1], conv_w[2]], axis=1)  # (C, 3C)
        self.conv_b_col = (0.02 * jax.random.normal(k4, (C,), jnp.float32)).reshape(C, 1)

    # sinusoidal time embedding (standard, non-learned) -- tiny glue
    def _time_embedding(self, t):
        half = self.emb_dim // 2
        freqs = jnp.exp(-math.log(10000.0) * jnp.arange(half, dtype=jnp.float32) / (half - 1))
        args = t.astype(jnp.float32)[:, None] * freqs[None, :]
        return jnp.concatenate([jnp.sin(args), jnp.cos(args)], axis=-1)   # (B, emb_dim)

    def _fused_loss(self, img, noise, c1, c2, p2w, scale, shift):
        B, C, N = img.shape
        return pl.pallas_call(
            fused_loss_kernel,
            out_shape=jax.ShapeDtypeStruct((B, 1, 128), jnp.float32),
            grid=(B,),
            in_specs=[
                pl.BlockSpec(memory_space=pltpu.MemorySpace.SMEM),   # c1  = sqrt_alphas_cumprod[t]
                pl.BlockSpec(memory_space=pltpu.MemorySpace.SMEM),   # c2  = sqrt(1-alphas_cumprod)[t]
                pl.BlockSpec(memory_space=pltpu.MemorySpace.SMEM),   # p2w = p2_loss_weight[t]
                pl.BlockSpec((1, C, N), lambda b: (b, 0, 0)),        # img (raw, [0,1])
                pl.BlockSpec((1, C, N), lambda b: (b, 0, 0)),        # noise / target
                pl.BlockSpec((1, C, 1), lambda b: (b, 0, 0)),        # FiLM scale
                pl.BlockSpec((1, C, 1), lambda b: (b, 0, 0)),        # FiLM shift
                pl.BlockSpec((C, 3 * C), lambda b: (0, 0)),          # conv weight (resident)
                pl.BlockSpec((C, 1), lambda b: (0, 0)),              # conv bias   (resident)
            ],
            out_specs=pl.BlockSpec((1, 1, 128), lambda b: (b, 0, 0)),
            compiler_params=pltpu.CompilerParams(
                dimension_semantics=("parallel",),
                vmem_limit_bytes=32 * 1024 * 1024,
            ),
        )(c1, c2, p2w, img, noise, scale, shift, self.conv_w_flat, self.conv_b_col)

    def forward(self, img, classes, key):
        B, C, N = img.shape
        assert N == self.seq_length, f"seq length must be {self.seq_length}"
        assert C == self.channels

        k_t, k_noise = jax.random.split(key)
        t = jax.random.randint(k_t, (B,), 0, self.num_timesteps)      # torch.randint analogue
        noise = jax.random.normal(k_noise, (B, C, N), jnp.float32)    # torch.randn_like analogue

        # extract(..., t): tiny per-batch gathers (glue); consumed as SMEM scalars in the kernel.
        c1 = self.sqrt_alphas_cumprod[t]
        c2 = self.sqrt_one_minus_alphas_cumprod[t]
        p2w = self.p2_loss_weight[t]

        # conditioning path (time + class embedding -> FiLM scale/shift): tiny glue matmul.
        cond = self._time_embedding(t) + self.class_emb[classes]      # (B, emb_dim)
        ss = cond @ self.cond_w + self.cond_b                         # (B, 2C)
        scale = ss[:, :C].reshape(B, C, 1).astype(jnp.float32)
        shift = ss[:, C:].reshape(B, C, 1).astype(jnp.float32)

        # Fused: normalize -> q_sample -> conv+FiLM denoiser -> weighted L1 (objective='pred_noise').
        per_batch = self._fused_loss(img.astype(jnp.float32), noise, c1, c2, p2w, scale, shift)
        return jnp.mean(per_batch[:, 0, 0])                           # final loss.mean() over batch


# ----------------------------- demo -----------------------------

if __name__ == "__main__":
    B, C, N = 2, 8, 128          # (8,128)-aligned demo shapes -> lane-dense blocks
    NUM_CLASSES = 10

    diffusion = GaussianDiffusion1DClsFreePallas(
        channels=C, seq_length=N, num_classes=NUM_CLASSES, timesteps=1000, seed=0
    )

    key = jax.random.PRNGKey(0)
    k_img, k_cls, k_fwd = jax.random.split(key, 3)
    img = jax.random.uniform(k_img, (B, C, N), jnp.float32)           # "data" in [0, 1]
    classes = jax.random.randint(k_cls, (B,), 0, NUM_CLASSES)

    loss_fn = jax.jit(lambda im, cl, k: diffusion.forward(im, cl, k))
    loss = loss_fn(img, classes, k_fwd)
    jax.block_until_ready(loss)
    assert loss.shape == () and bool(jnp.isfinite(loss))
    print("KERNEL_OK")
</pallas_src>

<mosaic_0001>
module attributes {stable_mosaic.version = 11 : i64} {
  func.func @fused_loss_kernel(%arg0: i32, %arg1: memref<2xf32, #tpu.memory_space<smem>>, %arg2: memref<2xf32, #tpu.memory_space<smem>>, %arg3: memref<2xf32, #tpu.memory_space<smem>>, %arg4: memref<1x8x128xf32, #tpu.memory_space<vmem>>, %arg5: memref<1x8x128xf32, #tpu.memory_space<vmem>>, %arg6: memref<1x8x1xf32, #tpu.memory_space<vmem>>, %arg7: memref<1x8x1xf32, #tpu.memory_space<vmem>>, %arg8: memref<8x24xf32, #tpu.memory_space<vmem>>, %arg9: memref<8x1xf32, #tpu.memory_space<vmem>>, %arg10: memref<1x1x128xf32, #tpu.memory_space<vmem>>) attributes {dimension_semantics = [#tpu.dimension_semantics<parallel>], iteration_bounds = array<i64: 2>, scalar_prefetch = 0 : i64, scratch_operands = 0 : i64, tpu.core_type = #tpu.core_type<tc>, window_params = [{transform_indices = @transform_0, window_bounds = array<i64: 2>}, {transform_indices = @transform_1, window_bounds = array<i64: 2>}, {transform_indices = @transform_2, window_bounds = array<i64: 2>}, {transform_indices = @transform_3, window_bounds = array<i64: 1, 8, 128>}, {transform_indices = @transform_4, window_bounds = array<i64: 1, 8, 128>}, {transform_indices = @transform_5, window_bounds = array<i64: 1, 8, 1>}, {transform_indices = @transform_6, window_bounds = array<i64: 1, 8, 1>}, {pipeline_mode = #tpu.pipeline_mode<synchronous>, transform_indices = @transform_7, window_bounds = array<i64: 8, 24>}, {pipeline_mode = #tpu.pipeline_mode<synchronous>, transform_indices = @transform_8, window_bounds = array<i64: 8, 1>}, {transform_indices = @transform_9, window_bounds = array<i64: 1, 1, 128>}]} {
    %c0 = arith.constant 0 : index
    %c0_0 = arith.constant 0 : index
    %c0_1 = arith.constant 0 : index
    %0 = vector.load %arg4[%c0, %c0_0, %c0_1] : memref<1x8x128xf32, #tpu.memory_space<vmem>>, vector<1x8x128xf32>
    %1 = vector.shape_cast %0 : vector<1x8x128xf32> to vector<8x128xf32>
    %c0_2 = arith.constant 0 : index
    %c0_3 = arith.constant 0 : index
    %c0_4 = arith.constant 0 : index
    %2 = vector.load %arg5[%c0_2, %c0_3, %c0_4] : memref<1x8x128xf32, #tpu.memory_space<vmem>>, vector<1x8x128xf32>
    %3 = vector.shape_cast %2 : vector<1x8x128xf32> to vector<8x128xf32>
    %4 = arith.index_cast %arg0 : i32 to index
    %5 = memref.load %arg1[%4] : memref<2xf32, #tpu.memory_space<smem>>
    %cst = arith.constant 2.000000e+00 : f32
    %6 = vector.broadcast %cst : f32 to vector<8x128xf32>
    %7 = arith.mulf %1, %6 : vector<8x128xf32>
    %cst_5 = arith.constant 1.000000e+00 : f32
    %8 = vector.broadcast %cst_5 : f32 to vector<8x128xf32>
    %9 = arith.subf %7, %8 : vector<8x128xf32>
    %10 = vector.broadcast %5 : f32 to vector<8x128xf32>
    %11 = arith.mulf %10, %9 : vector<8x128xf32>
    %12 = arith.index_cast %arg0 : i32 to index
    %13 = memref.load %arg2[%12] : memref<2xf32, #tpu.memory_space<smem>>
    %14 = vector.broadcast %13 : f32 to vector<8x128xf32>
    %15 = arith.mulf %14, %3 : vector<8x128xf32>
    %16 = arith.addf %11, %15 : vector<8x128xf32>
    %17 = tpu.iota {dimensions = array<i32: 1>} : vector<8x128xi32>
    %c0_i32 = arith.constant 0 : i32
    %18 = vector.broadcast %c0_i32 : i32 to vector<8x128xi32>
    %19 = arith.cmpi eq, %17, %18 : vector<8x128xi32>
    %c1_i32 = arith.constant 1 : i32
    %20 = tpu.dynamic_rotate %16 by %c1_i32 dim 1 : vector<8x128xf32>, i32 -> vector<8x128xf32>
    %cst_6 = arith.constant 0.000000e+00 : f32
    %21 = vector.broadcast %cst_6 : f32 to vector<8x128xf32>
    %22 = arith.select %19, %21, %20 : vector<8x128xi1>, vector<8x128xf32>
    %c127_i32 = arith.constant 127 : i32
    %23 = vector.broadcast %c127_i32 : i32 to vector<8x128xi32>
    %24 = arith.cmpi eq, %17, %23 : vector<8x128xi32>
    %c127_i32_7 = arith.constant 127 : i32
    %25 = tpu.dynamic_rotate %16 by %c127_i32_7 dim 1 : vector<8x128xf32>, i32 -> vector<8x128xf32>
    %cst_8 = arith.constant 0.000000e+00 : f32
    %26 = vector.broadcast %cst_8 : f32 to vector<8x128xf32>
    %27 = arith.select %24, %26, %25 : vector<8x128xi1>, vector<8x128xf32>
    %28 = tpu.concatenate %22, %16, %27 in 0 : vector<8x128xf32>, vector<8x128xf32>, vector<8x128xf32> -> vector<24x128xf32>
    %c0_9 = arith.constant 0 : index
    %c0_10 = arith.constant 0 : index
    %29 = vector.load %arg8[%c0_9, %c0_10] : memref<8x24xf32, #tpu.memory_space<vmem>>, vector<8x24xf32>
    %30 = arith.truncf %29 : vector<8x24xf32> to vector<8x24xbf16>
    %31 = arith.truncf %28 : vector<24x128xf32> to vector<24x128xbf16>
    %cst_11 = arith.constant dense<0.000000e+00> : vector<8x128xf32>
    %32 = tpu.matmul %30, %31, %cst_11 {dimension_numbers = #tpu.dot_dimension_numbers<[1], [0], [0], [1], [0, 0, 1, 1], [], []>} : vector<8x24xbf16>, vector<24x128xbf16>, vector<8x128xf32> -> vector<8x128xf32>
    %c0_12 = arith.constant 0 : index
    %c0_13 = arith.constant 0 : index
    %33 = vector.load %arg9[%c0_12, %c0_13] : memref<8x1xf32, #tpu.memory_space<vmem>>, vector<8x1xf32>
    %34 = vector.broadcast %33 : vector<8x1xf32> to vector<8x128xf32>
    %35 = arith.addf %32, %34 : vector<8x128xf32>
    %c0_14 = arith.constant 0 : index
    %c0_15 = arith.constant 0 : index
    %c0_16 = arith.constant 0 : index
    %36 = vector.load %arg6[%c0_14, %c0_15, %c0_16] : memref<1x8x1xf32, #tpu.memory_space<vmem>>, vector<1x8x1xf32>
    %37 = vector.shape_cast %36 : vector<1x8x1xf32> to vector<8x1xf32>
    %cst_17 = arith.constant 1.000000e+00 : f32
    %38 = vector.broadcast %cst_17 : f32 to vector<8x1xf32>
    %39 = arith.addf %38, %37 : vector<8x1xf32>
    %40 = vector.broadcast %39 : vector<8x1xf32> to vector<8x128xf32>
    %41 = arith.mulf %35, %40 : vector<8x128xf32>
    %c0_18 = arith.constant 0 : index
    %c0_19 = arith.constant 0 : index
    %c0_20 = arith.constant 0 : index
    %42 = vector.load %arg7[%c0_18, %c0_19, %c0_20] : memref<1x8x1xf32, #tpu.memory_space<vmem>>, vector<1x8x1xf32>
    %43 = vector.shape_cast %42 : vector<1x8x1xf32> to vector<8x1xf32>
    %44 = vector.broadcast %43 : vector<8x1xf32> to vector<8x128xf32>
    %45 = arith.addf %41, %44 : vector<8x128xf32>
    %46 = arith.subf %45, %3 : vector<8x128xf32>
    %47 = math.absf %46 : vector<8x128xf32>
    %48 = vector.shape_cast %47 : vector<8x128xf32> to vector<1x8x128xf32>
    %cst_21 = arith.constant dense<0.000000e+00> : vector<1xf32>
    %49 = vector.multi_reduction <add>, %48, %cst_21 [1, 2] : vector<1x8x128xf32> to vector<1xf32>
    %50 = vector.shape_cast %49 : vector<1xf32> to vector<1x1x1xf32>
    %51 = vector.extract %50[0, 0, 0] : f32 from vector<1x1x1xf32>
    %52 = arith.index_cast %arg0 : i32 to index
    %53 = memref.load %arg3[%52] : memref<2xf32, #tpu.memory_space<smem>>
    %54 = arith.mulf %51, %53 : f32
    %cst_22 = arith.constant 9.765625E-4 : f32
    %55 = arith.mulf %54, %cst_22 : f32
    %56 = vector.broadcast %55 : f32 to vector<1x1x128xf32>
    %c0_23 = arith.constant 0 : index
    %c0_24 = arith.constant 0 : index
    %c0_25 = arith.constant 0 : index
    %57 = vector.load %arg10[%c0_23, %c0_24, %c0_25] : memref<1x1x128xf32, #tpu.memory_space<vmem>>, vector<1x1x128xf32>
    tpu.vector_store %arg10[%c0_23, %c0_24, %c0_25], %56 {strides = array<i32>} : memref<1x1x128xf32, #tpu.memory_space<vmem>>, vector<1x1x128xf32>,
    return
  }
  func.func @transform_0(%arg0: i32) -> i32 {
    %c0_i32 = arith.constant 0 : i32
    %c0_i32_0 = arith.constant 0 : i32
    return %c0_i32 : i32
  }
  func.func @transform_1(%arg0: i32) -> i32 {
    %c0_i32 = arith.constant 0 : i32
    %c0_i32_0 = arith.constant 0 : i32
    return %c0_i32 : i32
  }
  func.func @transform_2(%arg0: i32) -> i32 {
    %c0_i32 = arith.constant 0 : i32
    %c0_i32_0 = arith.constant 0 : i32
    return %c0_i32 : i32
  }
  func.func @transform_3(%arg0: i32) -> (i32, i32, i32) {
    %c0_i32 = arith.constant 0 : i32
    %c0_i32_0 = arith.constant 0 : i32
    %c0_i32_1 = arith.constant 0 : i32
    return %arg0, %c0_i32, %c0_i32_0 : i32, i32, i32
  }
  func.func @transform_4(%arg0: i32) -> (i32, i32, i32) {
    %c0_i32 = arith.constant 0 : i32
    %c0_i32_0 = arith.constant 0 : i32
    %c0_i32_1 = arith.constant 0 : i32
    return %arg0, %c0_i32, %c0_i32_0 : i32, i32, i32
  }
  func.func @transform_5(%arg0: i32) -> (i32, i32, i32) {
    %c0_i32 = arith.constant 0 : i32
    %c0_i32_0 = arith.constant 0 : i32
    %c0_i32_1 = arith.constant 0 : i32
    return %arg0, %c0_i32, %c0_i32_0 : i32, i32, i32
  }
  func.func @transform_6(%arg0: i32) -> (i32, i32, i32) {
    %c0_i32 = arith.constant 0 : i32
    %c0_i32_0 = arith.constant 0 : i32
    %c0_i32_1 = arith.constant 0 : i32
    return %arg0, %c0_i32, %c0_i32_0 : i32, i32, i32
  }
  func.func @transform_7(%arg0: i32) -> (i32, i32) {
    %c0_i32 = arith.constant 0 : i32
    %c0_i32_0 = arith.constant 0 : i32
    %c0_i32_1 = arith.constant 0 : i32
    return %c0_i32, %c0_i32_0 : i32, i32
  }
  func.func @transform_8(%arg0: i32) -> (i32, i32) {
    %c0_i32 = arith.constant 0 : i32
    %c0_i32_0 = arith.constant 0 : i32
    %c0_i32_1 = arith.constant 0 : i32
    return %c0_i32, %c0_i32_0 : i32, i32
  }
  func.func @transform_9(%arg0: i32) -> (i32, i32, i32) {
    %c0_i32 = arith.constant 0 : i32
    %c0_i32_0 = arith.constant 0 : i32
    %c0_i32_1 = arith.constant 0 : i32
    return %arg0, %c0_i32, %c0_i32_0 : i32, i32, i32
  }
}

</mosaic_0001>

<bundles_post_ra>
// kernel: _lambda_.1
= control target key start
LH: loop header
LB: loop body
LE: loop exit
PB: predicated region body
PF: predicated region fallthrough
CT: control target
= control target key end

     0   :  { %14 = vsyncpa [#allocation3], 0  ;;  %s944_s0 = inlined_call_operand.vmem [shape: f32[2], index: 0, kind: input, shape index: {}]   ;;  %s945_s1 = inlined_call_operand.vmem [shape: f32[2], index: 1, kind: input, shape index: {}]   ;;  %s946_s2 = inlined_call_operand.vmem [shape: f32[2], index: 2, kind: input, shape index: {}]   ;;  %s947_s3 = inlined_call_operand.vmem [shape: f32[2,8,128], index: 3, kind: input, shape index: {}]   ;;  %s948_s4 = inlined_call_operand.vmem [shape: f32[2,8,128], index: 4, kind: input, shape index: {}]   ;;  %s949_s5 = inlined_call_operand.vmem [shape: f32[2,8,1], index: 5, kind: input, shape index: {}]   ;;  %s950_s6 = inlined_call_operand.vmem [shape: f32[2,8,1], index: 6, kind: input, shape index: {}]   ;;  %s951_s7 = inlined_call_operand.vmem [shape: f32[8,24], index: 7, kind: input, shape index: {}]   ;;  %s952_s8 = inlined_call_operand.vmem [shape: f32[8,1], index: 8, kind: input, shape index: {}]   ;;  %s953_s9 = inlined_call_operand.vmem [shape: f32[2,1,128], index: 9, kind: output, shape index: {}]  }
   0x1   :  { %15 = vsyncpa [#allocation5], 0  ;;  %s845_s30 = smov 0  }
   0x2 LB: > { %s851_s10 = sadd.s32 4294967295, %s784_s30   ;;  %p643_p0 = scmp.ge.s32.totalorder %s784_s30, 1  ;;  %s784_s30 = sphi %s845_s30, %s21_s30  }
   0x3   : > { %p261_p1 = scmp.lt.s32.totalorder %s784_s30, 3  ;;  %s285_s13 = sshll.u32 %s945_s1, 4  ;;  %s286_s13 = int_to_ptr.vmem [resolvable:$true] %s285_s13 }
   0x4   : > { %p954_p3 = scmp.eq.s32.totalorder %s851_s10, 0  ;;  %s274_s17 = sshll.u32 %s944_s0, 4  ;;  %s275_s17 = int_to_ptr.vmem [resolvable:$true] %s274_s17 }
   0x5   : > { %p858_p2 = pnand %p643_p0, %p261_p1  ;;  %s296_s20 = sshll.u32 %s946_s2, 4  ;;  %s877_s20 = int_to_ptr.vmem [resolvable:$true] %s296_s20 }
   0x6   : > { %s725_s22 = scalar_lea.vmem %s286_s13, 16  ;;  %p733_p10 = scmp.lt.s32.totalorder %s286_s13, %s286_s13 }
   0x7   : > { %s956_s14 = scalar_select %p858_p2, 1, 0 }
   0x8   : > { %p690_p4 = pneg %p858_p2  ;;  %p726_p6 = scmp.ne.s32.totalorder %s286_s13, %s725_s22 }
   0x9   : > { %p734_p11 = scmp.lt.s32.totalorder %s725_s22, %s725_s22 }
   0xa   : > { %p873_p5 = pnand %p954_p3, %p690_p4 }
   0xb   : > { %p735_p12 = por %p734_p11, %p733_p10 }
   0xc   : > { %p727_p7 = pneg %p873_p5 }
   0xe   : > { %p728_p8 = pnand %p727_p7, %p726_p6 }
  0x10   : > { %p729_p9 = pneg %p728_p8 }
  0x12   : > { %p736_p13 = pnand %p735_p12, %p729_p9 }
  0x14   : > { %739 = shalt.err (!%p736_p13)
}
  0x15   : > { %s786_s23 = smov [#allocation4]   ;;  %s740_s24 = scalar_lea.vmem %s275_s17, 16 }
  0x16   : > { %696 = dma.vmem_to_smem (!%p873_p5), %s286_s13, 16, %s786_s23, [#allocation5]  }
  0x17   : > { %p741_p0 = scmp.ne.s32.totalorder %s275_s17, %s740_s24  ;;  %p748_p3 = scmp.lt.s32.totalorder %s275_s17, %s275_s17 }
  0x18   : > { %p749_p2 = scmp.lt.s32.totalorder %s740_s24, %s740_s24 }
  0x19   : > { %p743_p1 = pnand %p741_p0, %p727_p7 }
  0x1a   : > { %p750_p6 = por %p749_p2, %p748_p3 }
  0x1b   : > { %p744_p4 = pneg %p743_p1 }
  0x1d   : > { %p751_p8 = pnand %p750_p6, %p744_p4 }
  0x1f   : > { %754 = shalt.err (!%p751_p8)
}
  0x20   : > { %s787_s25 = smov [#allocation2]   ;;  %s755_s26 = scalar_lea.vmem %s877_s20, 16 }
  0x21   : > { %693 = dma.vmem_to_smem (!%p873_p5), %s275_s17, 16, %s787_s25, [#allocation3]  }
  0x22   : > { %p756_p9 = scmp.ne.s32.totalorder %s877_s20, %s755_s26  ;;  %p763_p12 = scmp.lt.s32.totalorder %s877_s20, %s877_s20 }
  0x23   : > { %p764_p13 = scmp.lt.s32.totalorder %s755_s26, %s755_s26 }
  0x24   : > { %p758_p10 = pnand %p756_p9, %p727_p7 }
  0x25   : > { %p765_p2 = por %p764_p13, %p763_p12 }
  0x26   : > { %p759_p11 = pneg %p758_p10 }
  0x28   : > { %p766_p3 = pnand %p765_p2, %p759_p11 }
  0x2a   : > { %769 = shalt.err (!%p766_p3)
}
  0x2b   : > { %s788_s27 = smov [#allocation6]   ;;  %p958_p0 = scmp.ne.s32.totalorder %s956_s14, 0 }
  0x2c   : > { %699 = dma.vmem_to_smem (!%p873_p5), %s877_s20, 16, %s788_s27, [#allocation5]  }
  0x2d   : > { %343 = sbr.rel (%p958_p0) target bundleno = 632 (0x278), region = 56  ;;  %p959_p1 = scmp.eq.s32.totalorder (!%p958_p0), %s851_s10, 0 }
  0x34   : > { %775 = dma.done.wait (%p959_p1), [#allocation3], 16   ;;  %p960_p7 = pmov %p959_p1 }
  0x35   : > { %p961_p4 = pmov %p959_p1 }
  0x36   : > { %777 = vsyncadd (%p960_p7), [#allocation3], 4294967280 }
  0x37   : > { %779 = dma.done.wait (%p961_p4), [#allocation5], 32   ;;  %p962_p6 = pmov %p959_p1 }
  0x39   : > { %781 = vsyncadd (%p962_p6), [#allocation5], 4294967264 }
  0x3a   : > { %357 = sfence }
  0x3b   : > { %p397_p5 = scmp.lt.s32.totalorder %s851_s10, 1  ;;  %s419_s28 = sld [smem:[#allocation2 + %s851_s10]]  ;;  %v789_v0 = vmov 0.0   ;;  %vm790_vm0 = vmmov 0   ;;  %v442_v10 = vld [vmem:[%s952_s8] sm:$0xff]  ;;  %v791_v11 = vmov 0   ;;  %v428_v15 = vlaneseq }
  0x3c   : > { %s424_s29 = sld [smem:[#allocation4 + %s851_s10]]  ;;  %668 = vmatprep.subr.bf16.mxu0 %v789_v0  ;;  %672 = vmatprep.mubr.msk.bf16.mxu0 %vm790_vm0, %v789_v0  ;;  %s792_s24 = smov 1   ;;  %vm794_vm2 = vmmov 1   ;;  %vm452_vm5 = vcmask 1043456   ;;  %v438_v21 = vld [vmem:[%s951_s7] sm:$0xff]  ;;  %vm448_vm6 = vcmask 195584  }
  0x3d   : > { %s915_s11 = scalar_select %p397_p5, %s851_s10, 1  ;;  %723 = vset.pattern.permute.xlu1 %v791_v11  ;;  %724 = vset.pattern.permute.xlu0 %v791_v11  ;;  %v429_v16 = vand.u32 127, %v428_v15  ;;  %v439_v24 = vpack.c.bf16 %v438_v21, %v438_v21 }
  0x3e   : > { %445 = vperm.xlu1 %723, %v442_v10   ;;  %s522_s13 = sld [smem:[#allocation6 + %s851_s10]] }
  0x3f   : > { %s652_s12 = sshll.u32 %s915_s11, 3  ;;  %vm664_vm1 = vcmp.ne.s32.totalorder %v429_v16, 0  ;;  %vm434_vm4 = vcmp.eq.s32.totalorder %v429_v16, 127 }
  0x40   : > { %s400_s15 = scalar_lea.vmem %s947_s3, %s652_s12  ;;  %s404_s18 = scalar_lea.vmem %s948_s4, %s652_s12  ;;  %vm658_vm3 = vmpackc.low %vm794_vm2, %vm664_vm1 }
  0x41   : > { %v417_v1 = vld [vmem:[%s400_s15] sm:$0xff]  ;;  %v422_v5 = vstv %s419_s28  ;;  %s408_s23 = scalar_lea.vmem %s949_s5, %s652_s12  ;;  %s412_s27 = scalar_lea.vmem %s950_s6, %s652_s12 }
  0x42   : > { %v418_v2 = vld [vmem:[%s404_s18] sm:$0xff]  ;;  %v420_v3 = vmul.f32 2.0, %v417_v1  ;;  %v425_v4 = vstv %s424_s29  ;;  %s793_s28 = smov 127   ;;  %s415_s18 = scalar_lea.vmem %s953_s9, %s915_s11 }
  0x43   : > { %v426_v7 = vmul.f32 %v425_v4, %v418_v2  ;;  %v496_v12 = vld [vmem:[%s408_s23] sm:$0xff] }
  0x44   : > { %v656_v6 = vadd.f32 -1.0, %v420_v3  ;;  %v497_v13 = vadd.f32 1.0, %v496_v12  ;;  %v504_v14 = vld [vmem:[%s412_s27] sm:$0xff] }
  0x46   : > { %v423_v8 = vmul.f32 %v656_v6, %v422_v5  ;;  %500 = vperm.xlu1 %723, %v497_v13  }
  0x48   : > { %v427_v9 = vadd.f32 %v426_v7, %v423_v8 }
  0x4a   : > { %431 = vrot.lane.b32.xlu0 %v427_v9, %s792_s24 }
  0x4e   : > { %435 = vrot.lane.b32.xlu0 %v427_v9, %s793_s28 }
  0x52   : > { %507 = vperm.xlu0 %724, %v504_v14  }
  0xbc   : > { %v432_v17 = vpop.permute.xlu0 %431 }
  0xbd   : > { %v659_v18 = vpack.c.bf16 %v427_v9, %v432_v17  ;;  %v446_v25 = vpop.permute.xlu1 %445 }
  0xbf   : > { %669 = vmatpush3.bf16.msk.msra.mxu0 %vm658_vm3, %v659_v18 }
  0xc0   : > { %v436_v19 = vpop.permute.xlu0 %435  ;;  %670 = vmatprep.subr.bf16.mxu0 %v789_v0 }
  0xc1   : > { %v437_v20 = vsel %vm434_vm4, 0.0, %v436_v19 }
  0xc2   : > { %v441_v22 = vpack.c.bf16 %v437_v20, %v437_v20 }
  0xc4   : > { %v454_v23 = vsel %vm452_vm5, %v441_v22, 0 }
  0xc5   : > { %671 = vmatpush3.bf16.msra.mxu0 %v454_v23  ;;  %v501_v27 = vpop.permute.xlu1 %500 }
  0xc8   : > { %673 = vmatmul.mubr.msk.bf16.vlgmr.msra.gmra.mrb[0].mxu0 %vm448_vm6, %v439_v24 }
  0xd1   : > { %v508_v31 = vpop.permute.xlu0 %507 }
 0x19b   : > { %v490_v26 = vpop.f32.mrb[0].mxu0 }
 0x19c   : > { %v491_v28 = vadd.f32 %v490_v26, %v446_v25  ;;  %v674_v29 = vpop.f32.mrb[1].mxu0 }
 0x19d   : > { %v493_v30 = vpop.f32.mrb[2].mxu0 }
 0x19e   : > { %v675_v32 = vpop.f32.mrb[3].mxu0  ;;  %v503_v33 = vmul.f32 %v501_v27, %v491_v28 }
 0x1a0   : > { %v510_v34 = vadd.f32 %v508_v31, %v503_v33 }
 0x1a2   : > { %v511_v35 = vsub.f32 %v510_v34, %v418_v2 }
 0x1a4   : > { %v512_v36 = vand.u32 2147483647, %v511_v35 }
 0x1a6   : > { %513 = vadd.xlane.f32.xlu1 %v512_v36 }
 0x233   : > { %v514_v37 = vpop.xlane.xlu1 %513 }
 0x234   : > { %v515_v38 = vrot.slane %v514_v37, 4 }
 0x236   : > { %v516_v39 = vadd.f32 %v515_v38, %v514_v37 }
 0x238   : > { %v517_v40 = vrot.slane %v516_v39, 2 }
 0x23a   : > { %v518_v41 = vadd.f32 %v517_v40, %v516_v39 }
 0x23c   : > { %v519_v42 = vrot.slane %v518_v41, 1 }
 0x23e   : > { %v520_v43 = vadd.f32 %v519_v42, %v518_v41 }
 0x240   : > { %676 = vpush %v520_v43 }
 0x271   : > { %s677_s14 = spop %676 }
 0x272   : > { %s523_s15 = smul.f32 %s677_s14, %s522_s13 }
 0x274   : > { %s524_s19 = smul.f32 0.0009765625, %s523_s15 }
 0x276   : > { %v525_v44 = vstv %s524_s19 }
 0x277   : > { %526 = vst [vmem:[%s415_s18] sm:$0x1] %v525_v44 }
 0x278 PF: > { %s21_s30 = sadd.s32 1, %s784_s30  }
 0x279   : > { %p18_p8 = scmp.ge.s32.totalorder %s21_s30, 4  }
 0x27b   :  { %20 = sbr.rel (!%p18_p8) target bundleno = 2 (0x2), region = 108 }
 0x282   :  { %544 = vsyncpa [#allocation3], 1 }
 0x283   :  { %546 = vsyncpa [#allocation3 + $0x1], 1 }
 0x284   :  { %547 = vsyncpa [#allocation5], 1 }

</bundles_post_ra>
